<compile_context>
chip_gen: v6e
topology: v6e:2x2x1
jax: 0.10.0
libtpu: 0.0.40
codegen_flags: <defaults>
</compile_context>

<pallas_src>
import jax
import jax.numpy as jnp
from jax import lax
from jax.experimental import pallas as pl
from jax.experimental.pallas import tpu as pltpu


def residual_layer_pallas(x_nchw, w1_oihw, w2_oihw):
    """x_nchw: (N, Cin, H, W); w1_oihw: (Cres, Cin, 3, 3); w2_oihw: (Cout, Cres, 1, 1)."""
    N, Cin, H, W = x_nchw.shape
    Cres = w1_oihw.shape[0]
    Cout = w2_oihw.shape[0]
    assert Cout == Cin, "residual add requires h_dim == in_dim"

    PH, PW = H + 2, W + 2              # zero-padded spatial dims
    P = PH * PW                        # flat length of one padded image
    Lseg = pl.cdiv(P, 128) * 128       # per-image lane segment (multiple of 128)
    L = N * Lseg                       # total lane extent
    assert Lseg % 128 == 0 and Lseg >= P

    # ---- wrapper-side layout prep (pads/reshape/transpose; no margin pad, no im2col) ----
    # TODO(synk): for production, keep activations in this lane-dense (C, N*Lseg) layout
    # end-to-end (producer writes it, consumer reads it) so these HBM passes vanish.
    xp = jnp.pad(x_nchw, ((0, 0), (0, 0), (1, 1), (1, 1)))                  # (N,C,PH,PW)
    seg = jnp.pad(xp.reshape(N, Cin, P), ((0, 0), (0, 0), (0, Lseg - P)))   # (N,C,Lseg)
    flat = jnp.transpose(seg, (1, 0, 2)).reshape(Cin, L)                    # (C, N*Lseg)

    # 3x3 weights regrouped per kx column: w1_kx[kx, o, ky*Cin + i] = w1[o, i, ky, kx]
    w1_kx = jnp.transpose(w1_oihw, (3, 0, 2, 1)).reshape(3, Cres, 3 * Cin)  # (3,Cres,3Cin)
    w2 = w2_oihw[:, :, 0, 0]                                                # (Cout, Cres)

    # ---- lane-axis grid in whole image segments (self-contained blocks) ----
    # Pick the largest whole-segment block that divides N and keeps the per-block
    # working set comfortably inside VMEM on every generation (incl. v7x's 64 MiB):
    # ~272 B/lane of live data -> 32K lanes ~= 9 MiB/block.
    LANE_BUDGET = 32 * 1024
    segs_per_block = 1
    for d in range(N, 0, -1):
        if N % d == 0 and d * Lseg <= max(Lseg, LANE_BUDGET):
            segs_per_block = d
            break
    BL = segs_per_block * Lseg
    grid = (L // BL,)

    def kernel(x_ref, w1_ref, w2_ref, o_ref):
        # x_ref: (Cin, BL)  lane-dense segmented flat padded input (this block's segments)
        # w1_ref: (3, Cres, 3*Cin)   w2_ref: (Cout, Cres)   o_ref: (Cout, BL)
        x = x_ref[...]                                   # single load, reused for residual

        # Row-shifted views (XLU rolls; wrap-around only lands in discarded pad lanes).
        up = pltpu.roll(x, shift=PW, axis=1)             # x[l - PW]   (ky = 0)
        dn = pltpu.roll(x, shift=BL - PW, axis=1)        # x[l + PW]   (ky = 2)
        stack = jnp.concatenate([up, x, dn], axis=0)     # (3*Cin, BL), K-stacked operand
        p = jnp.maximum(stack, 0.0)                      # ReLU (commutes with zero-pad/shift)

        # 3x3 conv: one K = 3*Cin dot per kx column, then +-1 lane shifts on the partials.
        p0 = jnp.dot(w1_ref[0], p, preferred_element_type=jnp.float32)   # kx = 0
        p1 = jnp.dot(w1_ref[1], p, preferred_element_type=jnp.float32)   # kx = 1
        p2 = jnp.dot(w1_ref[2], p, preferred_element_type=jnp.float32)   # kx = 2
        y3 = (pltpu.roll(p0, shift=1, axis=1) + p1 +
              pltpu.roll(p2, shift=BL - 1, axis=1))                      # (Cres, BL)

        h = jnp.maximum(y3, 0.0)                                          # ReLU
        y = jnp.dot(w2_ref[...], h, preferred_element_type=jnp.float32)   # (Cout, BL)

        o_ref[...] = (x + y).astype(o_ref.dtype)          # residual add, unmasked stores

    out_flat = pl.pallas_call(
        kernel,
        out_shape=jax.ShapeDtypeStruct((Cout, L), x_nchw.dtype),
        grid=grid,
        in_specs=[
            pl.BlockSpec((Cin, BL), lambda i: (0, i)),
            pl.BlockSpec((3, Cres, 3 * Cin), lambda i: (0, 0, 0)),
            pl.BlockSpec((Cout, Cres), lambda i: (0, 0)),
        ],
        out_specs=pl.BlockSpec((Cout, BL), lambda i: (0, i)),
        compiler_params=pltpu.CompilerParams(
            dimension_semantics=("parallel",)),
    )(flat, w1_kx, w2)

    # Strip per-segment padding back to (N, Cout, H, W).
    out = out_flat.reshape(Cout, N, Lseg).transpose(1, 0, 2)[:, :, :P]     # (N,Cout,P)
    out = out.reshape(N, Cout, PH, PW)[:, :, 1:H + 1, 1:W + 1]
    return out


def residual_layer_ref(x_nchw, w1_oihw, w2_oihw):
    """Pure-JAX reference mirroring the PyTorch forward (NCHW / OIHW)."""
    dn = ("NCHW", "OIHW", "NCHW")
    h = jnp.maximum(x_nchw, 0.0)
    h = lax.conv_general_dilated(h, w1_oihw, (1, 1), "SAME", dimension_numbers=dn)
    h = jnp.maximum(h, 0.0)
    h = lax.conv_general_dilated(h, w2_oihw, (1, 1), "SAME", dimension_numbers=dn)
    return x_nchw + h


if __name__ == "__main__":
    # Module hyperparameters (residual requires in_dim == h_dim).
    in_dim, h_dim, res_h_dim = 4, 4, 8
    N, H, W = 2, 16, 16

    key = jax.random.PRNGKey(0)
    kx, k1, k2 = jax.random.split(key, 3)

    # Input and weights in PyTorch conventions (NCHW / OIHW).
    x_nchw = jax.random.normal(kx, (N, in_dim, H, W), dtype=jnp.float32)
    w1_oihw = jax.random.normal(k1, (res_h_dim, in_dim, 3, 3), dtype=jnp.float32) * 0.1
    w2_oihw = jax.random.normal(k2, (h_dim, res_h_dim, 1, 1), dtype=jnp.float32) * 0.1

    out = residual_layer_pallas(x_nchw, w1_oihw, w2_oihw)
    out = jax.block_until_ready(out)

    ref = residual_layer_ref(x_nchw, w1_oihw, w2_oihw)
    assert out.shape == ref.shape
    assert jnp.allclose(out, ref, atol=1e-4, rtol=1e-4), "mismatch vs reference"

    print("KERNEL_OK")
</pallas_src>

<mosaic_0001>
module attributes {stable_mosaic.version = 11 : i64} {
  func.func @kernel(%arg0: i32, %arg1: memref<4x768xf32, #tpu.memory_space<vmem>>, %arg2: memref<3x8x12xf32, #tpu.memory_space<vmem>>, %arg3: memref<4x8xf32, #tpu.memory_space<vmem>>, %arg4: memref<4x768xf32, #tpu.memory_space<vmem>>) attributes {dimension_semantics = [#tpu.dimension_semantics<parallel>], iteration_bounds = array<i64: 1>, scalar_prefetch = 0 : i64, scratch_operands = 0 : i64, tpu.core_type = #tpu.core_type<tc>, window_params = [{transform_indices = @transform_0, window_bounds = array<i64: 4, 768>}, {pipeline_mode = #tpu.pipeline_mode<synchronous>, transform_indices = @transform_1, window_bounds = array<i64: 3, 8, 12>}, {pipeline_mode = #tpu.pipeline_mode<synchronous>, transform_indices = @transform_2, window_bounds = array<i64: 4, 8>}, {transform_indices = @transform_3, window_bounds = array<i64: 4, 768>}]} {
    %c0 = arith.constant 0 : index
    %c0_0 = arith.constant 0 : index
    %0 = vector.load %arg1[%c0, %c0_0] : memref<4x768xf32, #tpu.memory_space<vmem>>, vector<4x768xf32>
    %c18_i32 = arith.constant 18 : i32
    %1 = tpu.dynamic_rotate %0 by %c18_i32 dim 1 : vector<4x768xf32>, i32 -> vector<4x768xf32>
    %c750_i32 = arith.constant 750 : i32
    %2 = tpu.dynamic_rotate %0 by %c750_i32 dim 1 : vector<4x768xf32>, i32 -> vector<4x768xf32>
    %3 = tpu.concatenate %1, %0, %2 in 0 : vector<4x768xf32>, vector<4x768xf32>, vector<4x768xf32> -> vector<12x768xf32>
    %cst = arith.constant 0.000000e+00 : f32
    %4 = vector.broadcast %cst : f32 to vector<12x768xf32>
    %5 = arith.maximumf %3, %4 : vector<12x768xf32>
    %c0_1 = arith.constant 0 : index
    %c0_2 = arith.constant 0 : index
    %c0_3 = arith.constant 0 : index
    %6 = vector.load %arg2[%c0_1, %c0_2, %c0_3] : memref<3x8x12xf32, #tpu.memory_space<vmem>>, vector<1x8x12xf32>
    %7 = vector.shape_cast %6 : vector<1x8x12xf32> to vector<8x12xf32>
    %cst_4 = arith.constant dense<0.000000e+00> : vector<8x768xf32>
    %8 = tpu.matmul %7, %5, %cst_4 {dimension_numbers = #tpu.dot_dimension_numbers<[1], [0], [0], [1], [0, 0, 1, 1], [], []>} : vector<8x12xf32>, vector<12x768xf32>, vector<8x768xf32> -> vector<8x768xf32>
    %c1 = arith.constant 1 : index
    %c0_5 = arith.constant 0 : index
    %c0_6 = arith.constant 0 : index
    %9 = vector.load %arg2[%c1, %c0_5, %c0_6] : memref<3x8x12xf32, #tpu.memory_space<vmem>>, vector<1x8x12xf32>
    %10 = vector.shape_cast %9 : vector<1x8x12xf32> to vector<8x12xf32>
    %cst_7 = arith.constant dense<0.000000e+00> : vector<8x768xf32>
    %11 = tpu.matmul %10, %5, %cst_7 {dimension_numbers = #tpu.dot_dimension_numbers<[1], [0], [0], [1], [0, 0, 1, 1], [], []>} : vector<8x12xf32>, vector<12x768xf32>, vector<8x768xf32> -> vector<8x768xf32>
    %c2 = arith.constant 2 : index
    %c0_8 = arith.constant 0 : index
    %c0_9 = arith.constant 0 : index
    %12 = vector.load %arg2[%c2, %c0_8, %c0_9] : memref<3x8x12xf32, #tpu.memory_space<vmem>>, vector<1x8x12xf32>
    %13 = vector.shape_cast %12 : vector<1x8x12xf32> to vector<8x12xf32>
    %cst_10 = arith.constant dense<0.000000e+00> : vector<8x768xf32>
    %14 = tpu.matmul %13, %5, %cst_10 {dimension_numbers = #tpu.dot_dimension_numbers<[1], [0], [0], [1], [0, 0, 1, 1], [], []>} : vector<8x12xf32>, vector<12x768xf32>, vector<8x768xf32> -> vector<8x768xf32>
    %c1_i32 = arith.constant 1 : i32
    %15 = tpu.dynamic_rotate %8 by %c1_i32 dim 1 : vector<8x768xf32>, i32 -> vector<8x768xf32>
    %16 = arith.addf %15, %11 : vector<8x768xf32>
    %c767_i32 = arith.constant 767 : i32
    %17 = tpu.dynamic_rotate %14 by %c767_i32 dim 1 : vector<8x768xf32>, i32 -> vector<8x768xf32>
    %18 = arith.addf %16, %17 : vector<8x768xf32>
    %cst_11 = arith.constant 0.000000e+00 : f32
    %19 = vector.broadcast %cst_11 : f32 to vector<8x768xf32>
    %20 = arith.maximumf %18, %19 : vector<8x768xf32>
    %c0_12 = arith.constant 0 : index
    %c0_13 = arith.constant 0 : index
    %21 = vector.load %arg3[%c0_12, %c0_13] : memref<4x8xf32, #tpu.memory_space<vmem>>, vector<4x8xf32>
    %cst_14 = arith.constant dense<0.000000e+00> : vector<4x768xf32>
    %22 = tpu.matmul %21, %20, %cst_14 {dimension_numbers = #tpu.dot_dimension_numbers<[1], [0], [0], [1], [0, 0, 1, 1], [], []>} : vector<4x8xf32>, vector<8x768xf32>, vector<4x768xf32> -> vector<4x768xf32>
    %23 = arith.addf %0, %22 : vector<4x768xf32>
    %c0_15 = arith.constant 0 : index
    %c0_16 = arith.constant 0 : index
    %24 = vector.load %arg4[%c0_15, %c0_16] : memref<4x768xf32, #tpu.memory_space<vmem>>, vector<4x768xf32>
    tpu.vector_store %arg4[%c0_15, %c0_16], %23 {strides = array<i32>} : memref<4x768xf32, #tpu.memory_space<vmem>>, vector<4x768xf32>,
    return
  }
  func.func @transform_0(%arg0: i32) -> (i32, i32) {
    %c0_i32 = arith.constant 0 : i32
    %c0_i32_0 = arith.constant 0 : i32
    return %c0_i32, %arg0 : i32, i32
  }
  func.func @transform_1(%arg0: i32) -> (i32, i32, i32) {
    %c0_i32 = arith.constant 0 : i32
    %c0_i32_0 = arith.constant 0 : i32
    %c0_i32_1 = arith.constant 0 : i32
    %c0_i32_2 = arith.constant 0 : i32
    return %c0_i32, %c0_i32_0, %c0_i32_1 : i32, i32, i32
  }
  func.func @transform_2(%arg0: i32) -> (i32, i32) {
    %c0_i32 = arith.constant 0 : i32
    %c0_i32_0 = arith.constant 0 : i32
    %c0_i32_1 = arith.constant 0 : i32
    return %c0_i32, %c0_i32_0 : i32, i32
  }
  func.func @transform_3(%arg0: i32) -> (i32, i32) {
    %c0_i32 = arith.constant 0 : i32
    %c0_i32_0 = arith.constant 0 : i32
    return %c0_i32, %arg0 : i32, i32
  }
}

</mosaic_0001>

<bundles_post_ra>
// kernel: tpu_custom_call.1
= control target key start
LH: loop header
LB: loop body
LE: loop exit
PB: predicated region body
PF: predicated region fallthrough
CT: control target
= control target key end

     0   :  { %8 = vsyncpa [#allocation3], 0  ;;  %s1437_s0 = inlined_call_operand.hbm [shape: f32[4,768], index: 0, kind: input, shape index: {}]   ;;  %s1438_s1 = inlined_call_operand.hbm [shape: f32[3,8,12], index: 1, kind: input, shape index: {}]   ;;  %s1439_s2 = inlined_call_operand.hbm [shape: f32[4,8], index: 2, kind: input, shape index: {}]   ;;  %s1440_s3 = inlined_call_operand.hbm [shape: f32[4,768], index: 3, kind: output, shape index: {}]  }
   0x1   :  { %9 = vsyncpa [#allocation6], 0 }
   0x2   :  { %10 = vsyncpa [#allocation4], 0  ;;  %s1242_s12 = smov [#allocation5]  }
   0x3   :  { %s26_s13 = sshll.u32 %s1242_s12, 4  ;;  %s27_s13 = int_to_ptr.vmem [resolvable:$true] %s26_s13 }
   0x4   :  { %s1164_s14 = scalar_lea.vmem %s27_s13, 384  ;;  %p1169_p1 = scmp.lt.s32.totalorder %s27_s13, %s27_s13 }
   0x5   :  { %p1165_p0 = scmp.ne.s32.totalorder %s27_s13, %s1164_s14  ;;  %p1170_p2 = scmp.lt.s32.totalorder %s1164_s14, %s1164_s14 }
   0x7   :  { %p1171_p3 = por %p1170_p2, %p1169_p1 }
   0x9   :  { %p1172_p4 = pnand %p1171_p3, %p1165_p0 }
   0xb   :  { %1175 = shalt.err (!%p1172_p4)
}
   0xc   :  { %s1243_s15 = smov 128   ;;  %s1244_s16 = smov 8  }
   0xd   :  { %32 = dma.hbm_to_vmem [thread:$0]  %s1438_s1, 384, %s27_s13, [#allocation6], %s1243_s15, %s1243_s15, %s1244_s16  }
   0xe   :  { %s1245_s19 = smov [#allocation2]   ;;  %s1246_s21 = smov [#allocation7]  }
   0xf   :  { %s17_s20 = sshll.u32 %s1245_s19, 4  ;;  %s39_s22 = sshll.u32 %s1246_s21, 4  ;;  %s18_s20 = int_to_ptr.vmem [resolvable:$true] %s17_s20  ;;  %s40_s22 = int_to_ptr.vmem [resolvable:$true] %s39_s22 }
  0x10   :  { %s1184_s23 = scalar_lea.vmem %s18_s20, 384  ;;  %p1189_p6 = scmp.lt.s32.totalorder %s18_s20, %s18_s20 }
  0x11   :  { %p1185_p5 = scmp.ne.s32.totalorder %s18_s20, %s1184_s23  ;;  %p1190_p7 = scmp.lt.s32.totalorder %s1184_s23, %s1184_s23 }
  0x13   :  { %p1191_p8 = por %p1190_p7, %p1189_p6 }
  0x15   :  { %p1192_p9 = pnand %p1191_p8, %p1185_p5 }
  0x17   :  { %1195 = shalt.err (!%p1192_p9)
}
  0x18   :  { %20 = dma.hbm_to_vmem [thread:$0]  %s1437_s0, 384, %s18_s20, [#allocation3]  }
  0x19   :  { %s1204_s26 = scalar_lea.vmem %s40_s22, 64  ;;  %p1209_p11 = scmp.lt.s32.totalorder %s40_s22, %s40_s22 }
  0x1a   :  { %p1205_p10 = scmp.ne.s32.totalorder %s40_s22, %s1204_s26  ;;  %p1210_p12 = scmp.lt.s32.totalorder %s1204_s26, %s1204_s26 }
  0x1c   :  { %p1211_p13 = por %p1210_p12, %p1209_p11 }
  0x1e   :  { %p1212_p0 = pnand %p1211_p13, %p1205_p10 }
  0x20   :  { %1215 = shalt.err (!%p1212_p0)
}
  0x21   :  { %42 = dma.hbm_to_vmem [thread:$0]  %s1439_s2, 64, %s40_s22, [#allocation6]  }
  0x22   :  { %1236 = dma.done.wait [#allocation3], 384  }
  0x23   :  { %1237 = vsyncadd [#allocation3], 4294966912 }
  0x24   :  { %1238 = dma.done.wait [#allocation6], 448  }
  0x25   :  { %1239 = vsyncadd [#allocation6], 4294966848  ;;  %v1282_v0 = vld [vmem:[#allocation2 + $0x8] sm:$0xff]  ;;  %v1284_v1 = vld [vmem:[#allocation2] sm:$0xff]  ;;  %s1247_s0 = smov 110   ;;  %s1248_s28 = smov 18   ;;  %v76_v7 = vlaneseq }
  0x26   :  { %89 = vrot.lane.b32.xlu0 %v1282_v0, %s1247_s0  ;;  %64 = vrot.lane.b32.xlu1 %v1284_v1, %s1248_s28  ;;  %v58_v2 = vcombine.high %v1284_v1, %v1284_v1  ;;  %v1290_v3 = vld [vmem:[#allocation2 + $0x10] sm:$0xff]  ;;  %v1249_v4 = vmov 0.0   ;;  %v59_v6 = vcombine.high %v1282_v0, %v1282_v0  ;;  %vm110_vm1 = vcmask 1043456   ;;  %v129_v30 = vld [vmem:[#allocation5] sm:$0xff]  ;;  %v366_v55 = vld [vmem:[#allocation5 + $0x8] sm:$0xff]  ;;  %s1250_s2 = smov 1  }
  0x27   :  { %216 = vmatprep.mubr.f32.mxu0 %v1249_v4  ;;  %287 = vmatprep.mubr.f32.mxu1 %v1249_v4  ;;  %v60_v5 = vcombine.high %v1290_v3, %v1290_v3  ;;  %v1302_v8 = vand.u32 127, %v76_v7  ;;  %v104_v14 = vcombine.low %v1284_v1, %v1284_v1  ;;  %vm130_vm3 = vcmask 97280   ;;  %v584_v56 = vld [vmem:[#allocation5 + $0x10] sm:$0xff]  ;;  %s1251_s29 = smov 127   ;;  %s1252_s30 = smov [#allocation8]  }
  0x28   :  { %v105_v33 = vcombine.low %v1282_v0, %v1282_v0  ;;  %v106_v40 = vcombine.low %v1290_v3, %v1290_v3  ;;  %vm858_vm6 = vcmask 64512   ;;  %s1099_s4 = sshll.u32 %s1252_s30, 4  ;;  %s1100_s4 = int_to_ptr.vmem [resolvable:$true] %s1099_s4 }
  0x29   :  { %vm78_vm0 = vcmp.lt.s32.totalorder %v1302_v8, 18  ;;  %vm97_vm2 = vcmp.lt.s32.totalorder %v1302_v8, 110  ;;  %vm813_vm4 = vcmp.lt.s32.totalorder %v1302_v8, 1  ;;  %vm838_vm5 = vcmp.lt.s32.totalorder %v1302_v8, 127  ;;  %s1216_s5 = scalar_lea.vmem %s1100_s4, 384  ;;  %p1221_p2 = scmp.lt.s32.totalorder %s1100_s4, %s1100_s4 }
  0x2a   :  { %85 = vrot.lane.b32.xlu0 %v1284_v1, %s1247_s0  ;;  %66 = vrot.lane.b32.xlu1 %v58_v2, %s1248_s28  ;;  %p1217_p1 = scmp.ne.s32.totalorder %s1100_s4, %s1216_s5  ;;  %p1222_p3 = scmp.lt.s32.totalorder %s1216_s5, %s1216_s5 }
  0x2c   :  { %p1223_p4 = por %p1222_p3, %p1221_p2 }
  0x2e   :  { %74 = vrot.lane.b32.xlu1 %v60_v5, %s1248_s28  ;;  %87 = vrot.lane.b32.xlu0 %v58_v2, %s1247_s0  ;;  %p1224_p5 = pnand %p1223_p4, %p1217_p1 }
  0x32   :  { %93 = vrot.lane.b32.xlu1 %v1290_v3, %s1247_s0  ;;  %91 = vrot.lane.b32.xlu0 %v59_v6, %s1247_s0 }
  0x36   :  { %70 = vrot.lane.b32.xlu1 %v59_v6, %s1248_s28  ;;  %68 = vrot.lane.b32.xlu0 %v1282_v0, %s1248_s28 }
  0x3a   :  { %72 = vrot.lane.b32.xlu1 %v1290_v3, %s1248_s28  ;;  %95 = vrot.lane.b32.xlu0 %v60_v5, %s1247_s0 }
  0x98   :  { %v90_v9 = vpop.permute.xlu0 %89  ;;  %v65_v10 = vpop.permute.xlu1 %64 }
  0x9c   :  { %v86_v11 = vpop.permute.xlu0 %85  ;;  %v67_v12 = vpop.permute.xlu1 %66 }
  0x9d   :  { %v83_v13 = vsel %vm78_vm0, %v65_v10, %v67_v12 }
  0x9e   :  { %v112_v17 = vsel %vm110_vm1, %v83_v13, %v1284_v1 }
  0x9f   :  { %v1325_v26 = vmax.f32 %v112_v17, 0.0 }
  0xa0   :  { %v75_v15 = vpop.permute.xlu1 %74  ;;  %v88_v16 = vpop.permute.xlu0 %87 }
  0xa1   :  { %v84_v18 = vsel %vm78_vm0, %v75_v15, %v65_v10  ;;  %v101_v19 = vsel %vm97_vm2, %v88_v16, %v90_v9  ;;  %v102_v20 = vsel %vm97_vm2, %v86_v11, %v88_v16 }
  0xa2   :  { %v111_v21 = vsel %vm110_vm1, %v84_v18, %v104_v14  ;;  %v1319_v22 = vmax.f32 %v102_v20, 0.0  ;;  %v1321_v23 = vmax.f32 %v101_v19, 0.0 }
  0xa3   :  { %v1333_v29 = vmax.f32 %v111_v21, 0.0 }
  0xa4   :  { %v94_v24 = vpop.permute.xlu1 %93  ;;  %1109 = vmatprep.subr.msk.mxu0 %vm110_vm1, %v1321_v23  ;;  %v92_v25 = vpop.permute.xlu0 %91 }
  0xa5   :  { %v99_v27 = vsel %vm97_vm2, %v92_v25, %v94_v24  ;;  %v100_v28 = vsel %vm97_vm2, %v90_v9, %v92_v25  ;;  %1110 = vmatpush1.msk.msra.mxu0 %vm110_vm1, %v1319_v22 }
  0xa6   :  { %v125_v31 = vmax.f32 %v100_v28, 0.0  ;;  %v126_v32 = vmax.f32 %v99_v27, 0.0  ;;  %182 = vmatprep.subr.mxu0 %v1325_v26 }
  0xa7   :  { %183 = vmatpush1.msra.mxu0 %v1333_v29 }
  0xa8   :  { %v71_v34 = vpop.permute.xlu1 %70  ;;  %1111 = vmatmul.mubr.msk.f32.vlgmr.msra.gmra.mxu0 %vm130_vm3, %v129_v30  ;;  %1112 = vmatprep.subr.msk.mxu1 %vm110_vm1, %v126_v32  ;;  %v69_v35 = vpop.permute.xlu0 %68 }
  0xa9   :  { %v81_v36 = vsel %vm78_vm0, %v69_v35, %v71_v34  ;;  %v82_v37 = vsel %vm78_vm0, %v67_v12, %v69_v35  ;;  %1113 = vmatpush1.msk.msra.mxu1 %vm110_vm1, %v125_v31  ;;  %358 = vmatprep.mubr.f32.mxu0 %v1249_v4 }
  0xaa   :  { %v113_v38 = vsel %vm110_vm1, %v82_v37, %v105_v33  ;;  %v114_v39 = vsel %vm110_vm1, %v81_v36, %v1282_v0 }
  0xab   :  { %v120_v41 = vmax.f32 %v114_v39, 0.0  ;;  %v119_v42 = vmax.f32 %v113_v38, 0.0 }
  0xac   :  { %v73_v43 = vpop.permute.xlu1 %72  ;;  %v96_v44 = vpop.permute.xlu0 %95 }
  0xad   :  { %v79_v45 = vsel %vm78_vm0, %v73_v43, %v75_v15  ;;  %v80_v46 = vsel %vm78_vm0, %v71_v34, %v73_v43  ;;  %v98_v47 = vsel %vm97_vm2, %v94_v24, %v96_v44  ;;  %v103_v48 = vsel %vm97_vm2, %v96_v44, %v86_v11  ;;  %253 = vmatprep.subr.mxu1 %v120_v41 }
  0xae   :  { %v115_v49 = vsel %vm110_vm1, %v80_v46, %v106_v40  ;;  %v116_v50 = vsel %vm110_vm1, %v79_v45, %v1290_v3  ;;  %v127_v51 = vmax.f32 %v98_v47, 0.0  ;;  %v128_v52 = vmax.f32 %v103_v48, 0.0  ;;  %254 = vmatpush1.msra.mxu1 %v119_v42  ;;  %v857_v45 = vld [vmem:[#allocation7] sm:$0xf] }
  0xaf   :  { %1114 = vmatmul.mubr.msk.f32.vlgmr.msra.gmra.mxu1 %vm130_vm3, %v129_v30  ;;  %1118 = vmatprep.subr.msk.mxu1 %vm110_vm1, %v1321_v23  ;;  %v122_v53 = vmax.f32 %v116_v50, 0.0  ;;  %v121_v54 = vmax.f32 %v115_v49, 0.0 }
  0xb0   :  { %1115 = vmatprep.subr.msk.mxu0 %vm110_vm1, %v128_v52  ;;  %1119 = vmatpush1.msk.msra.mxu1 %vm110_vm1, %v1319_v22 }
  0xb1   :  { %1116 = vmatpush1.msk.msra.mxu0 %vm110_vm1, %v127_v51  ;;  %400 = vmatprep.subr.mxu1 %v1325_v26 }
  0xb2   :  { %324 = vmatprep.subr.mxu0 %v122_v53  ;;  %401 = vmatpush1.msra.mxu1 %v1333_v29 }
  0xb3   :  { %325 = vmatpush1.msra.mxu0 %v121_v54  ;;  %434 = vmatprep.mubr.f32.mxu1 %v1249_v4 }
  0xb4   :  { %1124 = vmatprep.subr.msk.mxu1 %vm110_vm1, %v128_v52  ;;  %1117 = vmatmul.mubr.msk.f32.vlgmr.msra.gmra.mxu0 %vm130_vm3, %v129_v30 }
  0xb5   :  { %1120 = vmatmul.mubr.msk.f32.vlgmr.msra.gmra.mxu1 %vm130_vm3, %v366_v55  ;;  %1121 = vmatprep.subr.msk.mxu0 %vm110_vm1, %v126_v32 }
  0xb6   :  { %1125 = vmatpush1.msk.msra.mxu1 %vm110_vm1, %v127_v51  ;;  %1122 = vmatpush1.msk.msra.mxu0 %vm110_vm1, %v125_v31 }
  0xb7   :  { %542 = vmatprep.subr.mxu1 %v122_v53  ;;  %471 = vmatprep.subr.mxu0 %v120_v41 }
  0xb8   :  { %543 = vmatpush1.msra.mxu1 %v121_v54  ;;  %472 = vmatpush1.msra.mxu0 %v119_v42 }
  0xb9   :  { %505 = vmatprep.mubr.f32.mxu0 %v1249_v4  ;;  %576 = vmatprep.mubr.f32.mxu1 %v1249_v4 }
  0xba   :  { %1130 = vmatprep.subr.msk.mxu1 %vm110_vm1, %v126_v32  ;;  %1123 = vmatmul.mubr.msk.f32.vlgmr.msra.gmra.mxu0 %vm130_vm3, %v366_v55 }
  0xbb   :  { %1126 = vmatmul.mubr.msk.f32.vlgmr.msra.gmra.mxu1 %vm130_vm3, %v366_v55  ;;  %1127 = vmatprep.subr.msk.mxu0 %vm110_vm1, %v1321_v23 }
  0xbc   :  { %1131 = vmatpush1.msk.msra.mxu1 %vm110_vm1, %v125_v31  ;;  %1128 = vmatpush1.msk.msra.mxu0 %vm110_vm1, %v1319_v22 }
  0xbd   :  { %689 = vmatprep.subr.mxu1 %v120_v41  ;;  %618 = vmatprep.subr.mxu0 %v1325_v26 }
  0xbe   :  { %690 = vmatpush1.msra.mxu1 %v119_v42  ;;  %619 = vmatpush1.msra.mxu0 %v1333_v29 }
  0xbf   :  { %652 = vmatprep.mubr.f32.mxu0 %v1249_v4  ;;  %1133 = vmatprep.subr.msk.mxu0 %vm110_vm1, %v128_v52 }
  0xc0   :  { %1129 = vmatmul.mubr.msk.f32.vlgmr.msra.gmra.mxu0 %vm130_vm3, %v584_v56  ;;  %723 = vmatprep.mubr.f32.mxu1 %v1249_v4 }
  0xc1   :  { %1134 = vmatpush1.msk.msra.mxu0 %vm110_vm1, %v127_v51  ;;  %1132 = vmatmul.mubr.msk.f32.vlgmr.msra.gmra.mxu1 %vm130_vm3, %v584_v56 }
  0xc2   :  { %760 = vmatprep.subr.mxu0 %v122_v53  ;;  %794 = vmatprep.mubr.f32.mxu0 %v1249_v4 }
  0xc3   :  { %761 = vmatpush1.msra.mxu0 %v121_v54  ;;  %926 = vmatprep.mubr.f32.mxu1 %v1249_v4 }
  0xc4   :  { %1135 = vmatmul.mubr.msk.f32.vlgmr.msra.gmra.mxu0 %vm130_vm3, %v584_v56 }
  0xc5   :  { %997 = vmatprep.mubr.f32.mxu0 %v1249_v4 }
 0x168   :  { %v218_v57 = vpop.f32.mrf.mxu0 }
 0x169   :  { %801 = vrot.lane.b32.xlu0 %v218_v57, %s1250_s2 }
 0x16a   :  { %v220_v58 = vpop.f32.mrf.mxu0 }
 0x16b   :  { %803 = vrot.lane.b32.xlu1 %v220_v58, %s1250_s2 }
 0x16f   :  { %v289_v59 = vpop.f32.mrf.mxu1 }
 0x170   :  { %805 = vrot.lane.b32.xlu0 %v289_v59, %s1250_s2 }
 0x171   :  { %v291_v60 = vpop.f32.mrf.mxu1 }
 0x172   :  { %807 = vrot.lane.b32.xlu1 %v291_v60, %s1250_s2 }
 0x174   :  { %v360_v61 = vpop.f32.mrf.mxu0 }
 0x175   :  { %809 = vrot.lane.b32.xlu0 %v360_v61, %s1250_s2  ;;  %v436_v62 = vpop.f32.mrf.mxu1 }
 0x176   :  { %v362_v63 = vpop.f32.mrf.mxu0 }
 0x177   :  { %v438_v2 = vpop.f32.mrf.mxu1 }
 0x179   :  { %811 = vrot.lane.b32.xlu0 %v362_v63, %s1250_s2 }
 0x17a   :  { %v507_v5 = vpop.f32.mrf.mxu0 }
 0x17b   :  { %v578_v6 = vpop.f32.mrf.mxu1 }
 0x17c   :  { %v509_v7 = vpop.f32.mrf.mxu0 }
 0x17d   :  { %v580_v9 = vpop.f32.mrf.mxu1 }
 0x180   :  { %v654_v10 = vpop.f32.mrf.mxu0 }
 0x181   :  { %826 = vrot.lane.b32.xlu1 %v654_v10, %s1251_s29  ;;  %v725_v11 = vpop.f32.mrf.mxu1 }
 0x182   :  { %v656_v12 = vpop.f32.mrf.mxu0  ;;  %830 = vrot.lane.b32.xlu0 %v725_v11, %s1251_s29 }
 0x183   :  { %v727_v14 = vpop.f32.mrf.mxu1 }
 0x184   :  { %v796_v13 = vpop.f32.mrf.mxu0 }
 0x185   :  { %828 = vrot.lane.b32.xlu1 %v656_v12, %s1251_s29 }
 0x186   :  { %834 = vrot.lane.b32.xlu0 %v796_v13, %s1251_s29  ;;  %v798_v15 = vpop.f32.mrf.mxu0 }
 0x189   :  { %832 = vrot.lane.b32.xlu1 %v727_v14, %s1251_s29 }
 0x18d   :  { %836 = vrot.lane.b32.xlu1 %v798_v15, %s1251_s29 }
 0x1db   :  { %v802_v16 = vpop.permute.xlu0 %801 }
 0x1dd   :  { %v804_v19 = vpop.permute.xlu1 %803 }
 0x1de   :  { %v818_v23 = vsel %vm813_vm4, %v802_v16, %v804_v19 }
 0x1df   :  { %v821_v26 = vadd.f32 %v818_v23, %v438_v2 }
 0x1e2   :  { %v806_v17 = vpop.permute.xlu0 %805 }
 0x1e3   :  { %v817_v29 = vsel %vm813_vm4, %v804_v19, %v806_v17 }
 0x1e4   :  { %v808_v20 = vpop.permute.xlu1 %807  ;;  %v822_v36 = vadd.f32 %v817_v29, %v507_v5 }
 0x1e5   :  { %v816_v30 = vsel %vm813_vm4, %v806_v17, %v808_v20 }
 0x1e6   :  { %v823_v37 = vadd.f32 %v816_v30, %v509_v7 }
 0x1e7   :  { %v810_v18 = vpop.permute.xlu0 %809 }
 0x1e8   :  { %v815_v41 = vsel %vm813_vm4, %v808_v20, %v810_v18 }
 0x1e9   :  { %v824_v48 = vadd.f32 %v815_v41, %v578_v6 }
 0x1eb   :  { %v812_v21 = vpop.permute.xlu0 %811 }
 0x1ec   :  { %v819_v24 = vsel %vm813_vm4, %v812_v21, %v802_v16  ;;  %v814_v42 = vsel %vm813_vm4, %v810_v18, %v812_v21 }
 0x1ed   :  { %v820_v27 = vadd.f32 %v819_v24, %v436_v62  ;;  %v825_v49 = vadd.f32 %v814_v42, %v580_v9 }
 0x1f3   :  { %v827_v22 = vpop.permute.xlu1 %826 }
 0x1f4   :  { %v831_v25 = vpop.permute.xlu0 %830 }
 0x1f7   :  { %v829_v28 = vpop.permute.xlu1 %828 }
 0x1f8   :  { %v843_v31 = vsel %vm838_vm5, %v827_v22, %v829_v28  ;;  %v842_v32 = vsel %vm838_vm5, %v829_v28, %v831_v25  ;;  %v835_v35 = vpop.permute.xlu0 %834 }
 0x1f9   :  { %v845_v33 = vadd.f32 %v843_v31, %v820_v27  ;;  %v846_v34 = vadd.f32 %v842_v32, %v821_v26 }
 0x1fb   :  { %v851_v38 = vmax.f32 %v845_v33, 0.0  ;;  %v852_v39 = vmax.f32 %v846_v34, 0.0  ;;  %v833_v40 = vpop.permute.xlu1 %832 }
 0x1fc   :  { %v841_v43 = vsel %vm838_vm5, %v831_v25, %v833_v40  ;;  %v840_v44 = vsel %vm838_vm5, %v833_v40, %v835_v35 }
 0x1fd   :  { %v847_v46 = vadd.f32 %v841_v43, %v822_v36  ;;  %v848_v47 = vadd.f32 %v840_v44, %v823_v37  ;;  %892 = vmatprep.subr.mxu1 %v852_v39 }
 0x1fe   :  { %893 = vmatpush1.msra.mxu1 %v851_v38 }
 0x1ff   :  { %v853_v50 = vmax.f32 %v847_v46, 0.0  ;;  %v854_v51 = vmax.f32 %v848_v47, 0.0  ;;  %v837_v52 = vpop.permute.xlu1 %836  ;;  %1136 = vmatmul.mubr.msk.f32.vlgmr.msra.gmra.mxu1 %vm858_vm6, %v857_v45 }
 0x200   :  { %v839_v53 = vsel %vm838_vm5, %v835_v35, %v837_v52  ;;  %v844_v54 = vsel %vm838_vm5, %v837_v52, %v827_v22  ;;  %1068 = vmatprep.mubr.f32.mxu1 %v1249_v4 }
 0x201   :  { %v849_v55 = vadd.f32 %v839_v53, %v824_v48  ;;  %v850_v56 = vadd.f32 %v844_v54, %v825_v49  ;;  %963 = vmatprep.subr.mxu0 %v854_v51 }
 0x202   :  { %964 = vmatpush1.msra.mxu0 %v853_v50 }
 0x203   :  { %v855_v57 = vmax.f32 %v849_v55, 0.0  ;;  %v856_v58 = vmax.f32 %v850_v56, 0.0  ;;  %1137 = vmatmul.mubr.msk.f32.vlgmr.msra.gmra.mxu0 %vm858_vm6, %v857_v45 }
 0x205   :  { %1034 = vmatprep.subr.mxu1 %v856_v58 }
 0x206   :  { %1035 = vmatpush1.msra.mxu1 %v855_v57 }
 0x207   :  { %1138 = vmatmul.mubr.msk.f32.vlgmr.msra.gmra.mxu1 %vm858_vm6, %v857_v45 }
 0x2bf   :  { %v928_v59 = vpop.f32.mrf.mxu1 }
 0x2c1   :  { %v930_v60 = vpop.f32.mrf.mxu1 }
 0x2c2   :  { %v1081_v61 = vcombine.low %v928_v59, %v930_v60 }
 0x2c3   :  { %v999_v62 = vpop.f32.mrf.mxu0 }
 0x2c4   :  { %v1087_v8 = vadd.f32 %v1081_v61, %v1284_v1 }
 0x2c5   :  { %v1001_v63 = vpop.f32.mrf.mxu0 }
 0x2c6   :  { %1090 = vst [vmem:[#allocation8] sm:$0xff] %v1087_v8  ;;  %v1082_v4 = vcombine.low %v999_v62, %v1001_v63 }
 0x2c7   :  { %v1070_v2 = vpop.f32.mrf.mxu1 }
 0x2c8   :  { %v1088_v5 = vadd.f32 %v1082_v4, %v1282_v0 }
 0x2c9   :  { %v1072_v6 = vpop.f32.mrf.mxu1 }
 0x2ca   :  { %1091 = vst [vmem:[#allocation8 + $0x8] sm:$0xff] %v1088_v5  ;;  %v1083_v7 = vcombine.low %v1070_v2, %v1072_v6 }
 0x2cc   :  { %v1089_v9 = vadd.f32 %v1083_v7, %v1290_v3 }
 0x2ce   :  { %1092 = vst [vmem:[#allocation8 + $0x10] sm:$0xff] %v1089_v9 }
 0x2cf   :  { %1227 = shalt.err (!%p1224_p5)
}
 0x2d0   :  { %1102 = dma.vmem_to_hbm [thread:$0]  %s1100_s4, 384, %s1440_s3, [#allocation4]  }
 0x2d1   :  { %1240 = dma.done.wait [#allocation4], 384  }
 0x2d2   :  { %1241 = vsyncadd [#allocation4], 4294966912 }
 0x2d3   :  { %1106 = vsyncpa [#allocation3], 1 }
 0x2d4   :  { %1107 = vsyncpa [#allocation6], 1 }
 0x2d5   :  { %1108 = vsyncpa [#allocation4], 1 }

</bundles_post_ra>
